<compile_context>
chip_gen: v6e
topology: v6e:2x2x1
jax: 0.10.0
libtpu: 0.0.40
codegen_flags: <defaults>
</compile_context>

<pallas_src>
import functools

import jax
import jax.numpy as jnp
from jax.experimental import pallas as pl
from jax.experimental.pallas import tpu as pltpu


HIDDEN = 64        # logical hidden width (matches nn.Linear(in, 64))
HIDDEN_PAD = 128   # lane-full storage width; zero-padded, semantics unchanged


# ----------------------------------------------------------------------------
# Kernel
# ----------------------------------------------------------------------------
def _qnet_kernel(x_ref, w1_ref, b1_ref, w2_ref, b2_ref, w3_ref, b3_ref,
                 out_ref, *, mxu_dtype):
    # Weights arrive already in `mxu_dtype` (cast once in the wrapper).
    # Activations are cast to `mxu_dtype` right before each dot; accumulation,
    # bias add and ReLU stay in f32.
    x = x_ref[...]

    h1 = jnp.dot(x.astype(mxu_dtype), w1_ref[...],
                 preferred_element_type=jnp.float32) + b1_ref[...]
    h1 = jnp.maximum(h1, 0.0)

    h2 = jnp.dot(h1.astype(mxu_dtype), w2_ref[...],
                 preferred_element_type=jnp.float32) + b2_ref[...]
    h2 = jnp.maximum(h2, 0.0)

    out = jnp.dot(h2.astype(mxu_dtype), w3_ref[...],
                  preferred_element_type=jnp.float32) + b3_ref[...]
    out_ref[...] = out.astype(out_ref.dtype)


# ----------------------------------------------------------------------------
# Wrapper
# ----------------------------------------------------------------------------
def _dense_forward(x, p):
    """Plain-XLA forward (used as reference and as the small-batch path).

    Works identically on padded or unpadded params (padding is zeros).
    """
    h1 = jnp.maximum(x @ p["w1"] + p["b1"], 0.0)
    h2 = jnp.maximum(h1 @ p["w2"] + p["b2"], 0.0)
    return h2 @ p["w3"] + p["b3"]


def linear_qnet_forward(x, params, *, tile_b=128, use_bf16=True,
                        min_pallas_batch=64):
    """x: [B, input_size] f32; params: padded dict (see pad_params)."""
    B, in_size = x.shape
    out_size = params["w3"].shape[1]

    # Per-env-step inference (B ~ 1-8): pallas_call dispatch overhead exceeds
    # the compute by orders of magnitude; plain XLA is at the floor there.
    if B < min_pallas_batch:
        return _dense_forward(x, params)

    mxu_dtype = jnp.bfloat16 if use_bf16 else jnp.float32
    w1 = params["w1"].astype(mxu_dtype)
    w2 = params["w2"].astype(mxu_dtype)
    w3 = params["w3"].astype(mxu_dtype)
    b1, b2, b3 = params["b1"], params["b2"], params["b3"]

    tb = tile_b
    grid = (pl.cdiv(B, tb),)

    # Weights/biases: constant block index -> fetched once, VMEM-resident.
    def _resident(shape):
        return pl.BlockSpec(shape, lambda i: (0, 0))

    in_specs = [
        pl.BlockSpec((tb, in_size), lambda i: (i, 0)),   # x: batch-tiled
        _resident(w1.shape), _resident(b1.shape),
        _resident(w2.shape), _resident(b2.shape),
        _resident(w3.shape), _resident(b3.shape),
    ]
    out_specs = pl.BlockSpec((tb, out_size), lambda i: (i, 0))

    # Advisory cost so XLA schedules/overlaps this call sensibly in a bigger
    # jitted graph (logical, unpadded flops).
    flops = 2 * B * (in_size * HIDDEN + HIDDEN * HIDDEN + HIDDEN * out_size)
    param_bytes = sum(int(a.size) * a.dtype.itemsize
                      for a in (w1, b1, w2, b2, w3, b3))
    bytes_accessed = int(x.size) * 4 + B * out_size * 4 + param_bytes
    cost = pl.CostEstimate(flops=flops, transcendentals=0,
                           bytes_accessed=bytes_accessed)

    return pl.pallas_call(
        functools.partial(_qnet_kernel, mxu_dtype=mxu_dtype),
        out_shape=jax.ShapeDtypeStruct((B, out_size), jnp.float32),
        grid=grid,
        in_specs=in_specs,
        out_specs=out_specs,
        compiler_params=pltpu.CompilerParams(
            dimension_semantics=("parallel",)),
        cost_estimate=cost,
    )(x, w1, b1, w2, b2, w3, b3)


# ----------------------------------------------------------------------------
# Parameter construction
# ----------------------------------------------------------------------------
def init_params(key, input_size, output_size):
    """Deterministic init mimicking nn.Linear's U(-1/sqrt(fan_in), 1/sqrt(fan_in)).

    Weights stored [in, out] (transposed vs. PyTorch's [out, in]).
    """
    def linear_init(k, fan_in, fan_out):
        kw, kb = jax.random.split(k)
        bound = 1.0 / jnp.sqrt(jnp.float32(fan_in))
        w = jax.random.uniform(kw, (fan_in, fan_out), jnp.float32, -bound, bound)
        b = jax.random.uniform(kb, (1, fan_out), jnp.float32, -bound, bound)
        return w, b

    k1, k2, k3 = jax.random.split(key, 3)
    w1, b1 = linear_init(k1, input_size, HIDDEN)
    w2, b2 = linear_init(k2, HIDDEN, HIDDEN)
    w3, b3 = linear_init(k3, HIDDEN, output_size)
    return {"w1": w1, "b1": b1, "w2": w2, "b2": b2, "w3": w3, "b3": b3}


def pad_params(p):
    """Zero-pad hidden width 64 -> 128 so activation vregs are lane-full.

    Zero padding + ReLU(0)=0 keeps the math bit-identical in f32.
    """
    pad = HIDDEN_PAD - HIDDEN
    return {
        "w1": jnp.pad(p["w1"], ((0, 0), (0, pad))),
        "b1": jnp.pad(p["b1"], ((0, 0), (0, pad))),
        "w2": jnp.pad(p["w2"], ((0, pad), (0, pad))),
        "b2": jnp.pad(p["b2"], ((0, 0), (0, pad))),
        "w3": jnp.pad(p["w3"], ((0, pad), (0, 0))),
        "b3": p["b3"],
    }


# ----------------------------------------------------------------------------
# Self-test
# ----------------------------------------------------------------------------
if __name__ == "__main__":
    key = jax.random.PRNGKey(0)
    k_params, k_x = jax.random.split(key)

    # Snake-agent sizes: 11-dim state, 3 actions. Batch sized like a replay
    # minibatch so the batch grid (and weight residency) actually engages.
    input_size, output_size, batch, tile_b = 11, 3, 256, 128

    params = init_params(k_params, input_size, output_size)
    padded = pad_params(params)
    x = jax.random.normal(k_x, (batch, input_size), jnp.float32)

    ref = _dense_forward(x, params)

    # f32-operand MXU path: exact vs. reference.
    out_f32 = jax.block_until_ready(
        linear_qnet_forward(x, padded, tile_b=tile_b, use_bf16=False))
    assert out_f32.shape == (batch, output_size)
    assert jnp.allclose(out_f32, ref, atol=1e-5, rtol=1e-5), "f32 mismatch"

    # bf16-operand MXU path (default at training-batch scale): bf16 mantissa
    # needs a looser tolerance; accumulation/bias/ReLU remain f32.
    out_bf16 = jax.block_until_ready(
        linear_qnet_forward(x, padded, tile_b=tile_b, use_bf16=True))
    assert out_bf16.shape == (batch, output_size)
    assert jnp.allclose(out_bf16, ref, atol=5e-2, rtol=5e-2), "bf16 mismatch"

    # Small-batch per-env-step inference falls back to plain XLA.
    out_small = jax.block_until_ready(linear_qnet_forward(x[:4], padded))
    assert jnp.allclose(out_small, ref[:4], atol=1e-5, rtol=1e-5), "small-B mismatch"

    print("KERNEL_OK")
</pallas_src>

<mosaic_0001>
module attributes {stable_mosaic.version = 11 : i64} {
  func.func @_qnet_kernel(%arg0: i32, %arg1: memref<128x11xf32, #tpu.memory_space<vmem>>, %arg2: memref<11x128xf32, #tpu.memory_space<vmem>>, %arg3: memref<1x128xf32, #tpu.memory_space<vmem>>, %arg4: memref<128x128xf32, #tpu.memory_space<vmem>>, %arg5: memref<1x128xf32, #tpu.memory_space<vmem>>, %arg6: memref<128x3xf32, #tpu.memory_space<vmem>>, %arg7: memref<1x3xf32, #tpu.memory_space<vmem>>, %arg8: memref<128x3xf32, #tpu.memory_space<vmem>>) attributes {dimension_semantics = [#tpu.dimension_semantics<parallel>], iteration_bounds = array<i64: 2>, scalar_prefetch = 0 : i64, scratch_operands = 0 : i64, tpu.core_type = #tpu.core_type<tc>, window_params = [{transform_indices = @transform_0, window_bounds = array<i64: 128, 11>}, {pipeline_mode = #tpu.pipeline_mode<synchronous>, transform_indices = @transform_1, window_bounds = array<i64: 11, 128>}, {pipeline_mode = #tpu.pipeline_mode<synchronous>, transform_indices = @transform_2, window_bounds = array<i64: 1, 128>}, {pipeline_mode = #tpu.pipeline_mode<synchronous>, transform_indices = @transform_3, window_bounds = array<i64: 128, 128>}, {pipeline_mode = #tpu.pipeline_mode<synchronous>, transform_indices = @transform_4, window_bounds = array<i64: 1, 128>}, {pipeline_mode = #tpu.pipeline_mode<synchronous>, transform_indices = @transform_5, window_bounds = array<i64: 128, 3>}, {pipeline_mode = #tpu.pipeline_mode<synchronous>, transform_indices = @transform_6, window_bounds = array<i64: 1, 3>}, {transform_indices = @transform_7, window_bounds = array<i64: 128, 3>}]} {
    %c0 = arith.constant 0 : index
    %c0_0 = arith.constant 0 : index
    %0 = vector.load %arg1[%c0, %c0_0] : memref<128x11xf32, #tpu.memory_space<vmem>>, vector<128x11xf32>
    %c0_1 = arith.constant 0 : index
    %c0_2 = arith.constant 0 : index
    %1 = vector.load %arg2[%c0_1, %c0_2] : memref<11x128xf32, #tpu.memory_space<vmem>>, vector<11x128xf32>
    %cst = arith.constant dense<0.000000e+00> : vector<128x128xf32>
    %2 = tpu.matmul %0, %1, %cst {dimension_numbers = #tpu.dot_dimension_numbers<[1], [0], [0], [1], [0, 0, 1, 1], [], []>} : vector<128x11xf32>, vector<11x128xf32>, vector<128x128xf32> -> vector<128x128xf32>
    %c0_3 = arith.constant 0 : index
    %c0_4 = arith.constant 0 : index
    %3 = vector.load %arg3[%c0_3, %c0_4] : memref<1x128xf32, #tpu.memory_space<vmem>>, vector<1x128xf32>
    %4 = vector.broadcast %3 : vector<1x128xf32> to vector<128x128xf32>
    %5 = arith.addf %2, %4 : vector<128x128xf32>
    %cst_5 = arith.constant 0.000000e+00 : f32
    %6 = vector.broadcast %cst_5 : f32 to vector<128x128xf32>
    %7 = arith.maximumf %5, %6 : vector<128x128xf32>
    %c0_6 = arith.constant 0 : index
    %c0_7 = arith.constant 0 : index
    %8 = vector.load %arg4[%c0_6, %c0_7] : memref<128x128xf32, #tpu.memory_space<vmem>>, vector<128x128xf32>
    %cst_8 = arith.constant dense<0.000000e+00> : vector<128x128xf32>
    %9 = tpu.matmul %7, %8, %cst_8 {dimension_numbers = #tpu.dot_dimension_numbers<[1], [0], [0], [1], [0, 0, 1, 1], [], []>} : vector<128x128xf32>, vector<128x128xf32>, vector<128x128xf32> -> vector<128x128xf32>
    %c0_9 = arith.constant 0 : index
    %c0_10 = arith.constant 0 : index
    %10 = vector.load %arg5[%c0_9, %c0_10] : memref<1x128xf32, #tpu.memory_space<vmem>>, vector<1x128xf32>
    %11 = vector.broadcast %10 : vector<1x128xf32> to vector<128x128xf32>
    %12 = arith.addf %9, %11 : vector<128x128xf32>
    %cst_11 = arith.constant 0.000000e+00 : f32
    %13 = vector.broadcast %cst_11 : f32 to vector<128x128xf32>
    %14 = arith.maximumf %12, %13 : vector<128x128xf32>
    %c0_12 = arith.constant 0 : index
    %c0_13 = arith.constant 0 : index
    %15 = vector.load %arg6[%c0_12, %c0_13] : memref<128x3xf32, #tpu.memory_space<vmem>>, vector<128x3xf32>
    %cst_14 = arith.constant dense<0.000000e+00> : vector<128x3xf32>
    %16 = tpu.matmul %14, %15, %cst_14 {dimension_numbers = #tpu.dot_dimension_numbers<[1], [0], [0], [1], [0, 0, 1, 1], [], []>} : vector<128x128xf32>, vector<128x3xf32>, vector<128x3xf32> -> vector<128x3xf32>
    %c0_15 = arith.constant 0 : index
    %c0_16 = arith.constant 0 : index
    %17 = vector.load %arg7[%c0_15, %c0_16] : memref<1x3xf32, #tpu.memory_space<vmem>>, vector<1x3xf32>
    %18 = vector.broadcast %17 : vector<1x3xf32> to vector<128x3xf32>
    %19 = arith.addf %16, %18 : vector<128x3xf32>
    %c0_17 = arith.constant 0 : index
    %c0_18 = arith.constant 0 : index
    %20 = vector.load %arg8[%c0_17, %c0_18] : memref<128x3xf32, #tpu.memory_space<vmem>>, vector<128x3xf32>
    tpu.vector_store %arg8[%c0_17, %c0_18], %19 {strides = array<i32>} : memref<128x3xf32, #tpu.memory_space<vmem>>, vector<128x3xf32>,
    return
  }
  func.func @transform_0(%arg0: i32) -> (i32, i32) {
    %c0_i32 = arith.constant 0 : i32
    %c0_i32_0 = arith.constant 0 : i32
    return %arg0, %c0_i32 : i32, i32
  }
  func.func @transform_1(%arg0: i32) -> (i32, i32) {
    %c0_i32 = arith.constant 0 : i32
    %c0_i32_0 = arith.constant 0 : i32
    %c0_i32_1 = arith.constant 0 : i32
    return %c0_i32, %c0_i32_0 : i32, i32
  }
  func.func @transform_2(%arg0: i32) -> (i32, i32) {
    %c0_i32 = arith.constant 0 : i32
    %c0_i32_0 = arith.constant 0 : i32
    %c0_i32_1 = arith.constant 0 : i32
    return %c0_i32, %c0_i32_0 : i32, i32
  }
  func.func @transform_3(%arg0: i32) -> (i32, i32) {
    %c0_i32 = arith.constant 0 : i32
    %c0_i32_0 = arith.constant 0 : i32
    %c0_i32_1 = arith.constant 0 : i32
    return %c0_i32, %c0_i32_0 : i32, i32
  }
  func.func @transform_4(%arg0: i32) -> (i32, i32) {
    %c0_i32 = arith.constant 0 : i32
    %c0_i32_0 = arith.constant 0 : i32
    %c0_i32_1 = arith.constant 0 : i32
    return %c0_i32, %c0_i32_0 : i32, i32
  }
  func.func @transform_5(%arg0: i32) -> (i32, i32) {
    %c0_i32 = arith.constant 0 : i32
    %c0_i32_0 = arith.constant 0 : i32
    %c0_i32_1 = arith.constant 0 : i32
    return %c0_i32, %c0_i32_0 : i32, i32
  }
  func.func @transform_6(%arg0: i32) -> (i32, i32) {
    %c0_i32 = arith.constant 0 : i32
    %c0_i32_0 = arith.constant 0 : i32
    %c0_i32_1 = arith.constant 0 : i32
    return %c0_i32, %c0_i32_0 : i32, i32
  }
  func.func @transform_7(%arg0: i32) -> (i32, i32) {
    %c0_i32 = arith.constant 0 : i32
    %c0_i32_0 = arith.constant 0 : i32
    return %arg0, %c0_i32 : i32, i32
  }
}

</mosaic_0001>

<bundles_post_ra>
// kernel: tpu_custom_call.1
= control target key start
LH: loop header
LB: loop body
LE: loop exit
PB: predicated region body
PF: predicated region fallthrough
CT: control target
= control target key end

     0   :  { %s1255_s24 = smov 0   ;;  %s1458_s0 = inlined_call_operand.vmem [shape: f32[256,11], index: 0, kind: input, shape index: {}]   ;;  %s1459_s1 = inlined_call_operand.vmem [shape: f32[11,128], index: 1, kind: input, shape index: {}]   ;;  %s1460_s2 = inlined_call_operand.vmem [shape: f32[1,128], index: 2, kind: input, shape index: {}]   ;;  %s1461_s3 = inlined_call_operand.vmem [shape: f32[128,128], index: 3, kind: input, shape index: {}]   ;;  %s1462_s4 = inlined_call_operand.vmem [shape: f32[1,128], index: 4, kind: input, shape index: {}]   ;;  %s1463_s5 = inlined_call_operand.vmem [shape: f32[128,3], index: 5, kind: input, shape index: {}]   ;;  %s1464_s6 = inlined_call_operand.vmem [shape: f32[1,3], index: 6, kind: input, shape index: {}]   ;;  %s1465_s7 = inlined_call_operand.vmem [shape: f32[256,3], index: 7, kind: output, shape index: {}]  }
   0x1 LB: > { %s946_s25 = sadd.s32 4294967295, %s1213_s24   ;;  %p950_p0 = scmp.ge.s32.totalorder %s1213_s24, 1  ;;  %s1213_s24 = sphi %s1255_s24, %s17_s24  }
   0x2   : > { %p238_p1 = scmp.lt.s32.totalorder %s1213_s24, 3 }
   0x4   : > { %p239_p2 = pnand %p950_p0, %p238_p1 }
   0x5   : > { %s951_s30 = sshll.u32 (!%p239_p2), %s946_s25, 4 }
   0x6   : > { %242 = sbr.rel (%p239_p2) target bundleno = 643 (0x283), region = 48  ;;  %p271_p3 = scmp.lt.s32.totalorder (!%p239_p2), %s951_s30, 31 }
   0xb   : > { %v299_v0 = vld [vmem:[%s1459_s1 + $0x8] sm:$0x7]  ;;  %vm356_vm0 = vcmask 1042432   ;;  %v298_v1 = vld [vmem:[%s1459_s1] sm:$0xff]  ;;  %v536_v2 = vld [vmem:[%s1461_s3 + $0x78] sm:$0xff]  ;;  %s1467_s30 = smov (!%p271_p3, %s951_s30), 31 }
   0xc   : > { %1059 = vmatprep.subr.msk.mxu0 %vm356_vm0, %v299_v0  ;;  %v535_v3 = vld [vmem:[%s1461_s3 + $0x70] sm:$0xff]  ;;  %1087 = vmatprep.subr.mxu1 %v536_v2  ;;  %v534_v4 = vld [vmem:[%s1461_s3 + $0x68] sm:$0xff]  ;;  %s952_s14 = sshll.u32 %s1467_s30, 3  ;;  %vm307_vm1 = vcmask 89088   ;;  %v533_v5 = vld [vmem:[%s1461_s3 + $0x60] sm:$0xff]  ;;  %vm873_vm2 = vcmask 23552  }
   0xd   : > { %1060 = vmatpush3.msk.msra.mxu0 %vm356_vm0, %v299_v0  ;;  %1088 = vmatpush3.msra.mxu1 %v536_v2  ;;  %s1289_s19 = scalar_lea.vmem %s1458_s0, %s952_s14  ;;  %v532_v6 = vld [vmem:[%s1461_s3 + $0x58] sm:$0xff]  ;;  %v531_v10 = vld [vmem:[%s1461_s3 + $0x50] sm:$0xff]  ;;  %v530_v13 = vld [vmem:[%s1461_s3 + $0x48] sm:$0xff]  ;;  %s1421_s25 = scalar_lea.vmem %s1465_s7, %s952_s14 }
   0xe   : > { %1061 = vmatprep.subr.mxu0 %v298_v1  ;;  %1089 = vmatprep.subr.mxu1 %v535_v3  ;;  %v282_v7 = vld [vmem:[%s1289_s19] sm:$0xff]  ;;  %v283_v8 = vld [vmem:[%s1289_s19 + $0x8] sm:$0xff]  ;;  %v284_v9 = vld [vmem:[%s1289_s19 + $0x10] sm:$0xff] }
   0xf   : > { %1062 = vmatpush3.msra.mxu0 %v298_v1  ;;  %1090 = vmatpush3.msra.mxu1 %v535_v3  ;;  %v285_v11 = vld [vmem:[%s1289_s19 + $0x18] sm:$0xff]  ;;  %v286_v12 = vld [vmem:[%s1289_s19 + $0x20] sm:$0xff]  ;;  %v287_v15 = vld [vmem:[%s1289_s19 + $0x28] sm:$0xff] }
  0x10   : > { %1091 = vmatprep.subr.mxu1 %v534_v4  ;;  %1063 = vmatprep.mubr.msk.f32.mxu0 %vm307_vm1, %v282_v7  ;;  %v529_v14 = vld [vmem:[%s1461_s3 + $0x40] sm:$0xff]  ;;  %v288_v16 = vld [vmem:[%s1289_s19 + $0x30] sm:$0xff]  ;;  %v528_v17 = vld [vmem:[%s1461_s3 + $0x38] sm:$0xff] }
  0x11   : > { %1092 = vmatpush3.msra.mxu1 %v534_v4  ;;  %1064 = vmatmul.mubr.msk.f32.vlgmr.msra.gmra.mxu0 %vm307_vm1, %v283_v8  ;;  %v527_v18 = vld [vmem:[%s1461_s3 + $0x30] sm:$0xff]  ;;  %v289_v19 = vld [vmem:[%s1289_s19 + $0x38] sm:$0xff]  ;;  %v290_v20 = vld [vmem:[%s1289_s19 + $0x40] sm:$0xff] }
  0x12   : > { %1093 = vmatprep.subr.mxu1 %v533_v5  ;;  %1066 = vmatprep.mubr.msk.f32.mxu0 %vm307_vm1, %v284_v9  ;;  %v526_v21 = vld [vmem:[%s1461_s3 + $0x28] sm:$0xff]  ;;  %v525_v22 = vld [vmem:[%s1461_s3 + $0x20] sm:$0xff]  ;;  %v292_v24 = vld [vmem:[%s1289_s19 + $0x50] sm:$0xff] }
  0x13   : > { %1094 = vmatpush3.msra.mxu1 %v533_v5  ;;  %v291_v23 = vld [vmem:[%s1289_s19 + $0x48] sm:$0xff]  ;;  %v293_v25 = vld [vmem:[%s1289_s19 + $0x58] sm:$0xff]  ;;  %v294_v26 = vld [vmem:[%s1289_s19 + $0x60] sm:$0xff] }
  0x14   : > { %1095 = vmatprep.subr.mxu1 %v532_v6  ;;  %v295_v27 = vld [vmem:[%s1289_s19 + $0x68] sm:$0xff]  ;;  %v296_v28 = vld [vmem:[%s1289_s19 + $0x70] sm:$0xff]  ;;  %v297_v29 = vld [vmem:[%s1289_s19 + $0x78] sm:$0xff] }
  0x15   : > { %1096 = vmatpush3.msra.mxu1 %v532_v6  ;;  %1067 = vmatmul.mubr.msk.f32.gmra.mxu0 %vm307_vm1, %v285_v11  ;;  %v524_v30 = vld [vmem:[%s1461_s3 + $0x18] sm:$0xff]  ;;  %v523_v31 = vld [vmem:[%s1461_s3 + $0x10] sm:$0xff]  ;;  %v522_v32 = vld [vmem:[%s1461_s3 + $0x8] sm:$0xff] }
  0x16   : > { %1097 = vmatprep.subr.mxu1 %v531_v10  ;;  %1069 = vmatprep.mubr.msk.f32.mxu0 %vm307_vm1, %v286_v12  ;;  %v521_v33 = vld [vmem:[%s1461_s3] sm:$0xff]  ;;  %v720_v34 = vld [vmem:[%s1463_s5 + $0x78] sm:$0xff]  ;;  %v719_v35 = vld [vmem:[%s1463_s5 + $0x70] sm:$0xff] }
  0x17   : > { %1098 = vmatpush3.msra.mxu1 %v531_v10  ;;  %1143 = vmatprep.subr.mxu0 %v720_v34  ;;  %v718_v36 = vld [vmem:[%s1463_s5 + $0x68] sm:$0xff]  ;;  %v717_v37 = vld [vmem:[%s1463_s5 + $0x60] sm:$0xff]  ;;  %v716_v38 = vld [vmem:[%s1463_s5 + $0x58] sm:$0xff] }
  0x18   : > { %1099 = vmatprep.subr.mxu1 %v530_v13  ;;  %1144 = vmatpush3.msra.mxu0 %v720_v34  ;;  %v715_v39 = vld [vmem:[%s1463_s5 + $0x50] sm:$0xff]  ;;  %v714_v40 = vld [vmem:[%s1463_s5 + $0x48] sm:$0xff]  ;;  %v713_v41 = vld [vmem:[%s1463_s5 + $0x40] sm:$0xff] }
  0x19   : > { %1100 = vmatpush3.msra.mxu1 %v530_v13  ;;  %1070 = vmatmul.mubr.msk.f32.gmra.mxu0 %vm307_vm1, %v287_v15  ;;  %v712_v42 = vld [vmem:[%s1463_s5 + $0x38] sm:$0xff]  ;;  %v711_v43 = vld [vmem:[%s1463_s5 + $0x30] sm:$0xff]  ;;  %v710_v44 = vld [vmem:[%s1463_s5 + $0x28] sm:$0xff] }
  0x1a   : > { %1101 = vmatprep.subr.mxu1 %v529_v14  ;;  %1072 = vmatprep.mubr.msk.f32.mxu0 %vm307_vm1, %v288_v16  ;;  %v709_v45 = vld [vmem:[%s1463_s5 + $0x20] sm:$0xff]  ;;  %v708_v46 = vld [vmem:[%s1463_s5 + $0x18] sm:$0xff] }
  0x1b   : > { %1102 = vmatpush3.msra.mxu1 %v529_v14  ;;  %1145 = vmatprep.subr.mxu0 %v719_v35  ;;  %v955_v47 = vld [vmem:[%s1460_s2] ss:$0 sm:$0xff] }
  0x1c   : > { %1103 = vmatprep.subr.mxu1 %v528_v17  ;;  %1146 = vmatpush3.msra.mxu0 %v719_v35  ;;  %v705_v34 = vld [vmem:[%s1463_s5] sm:$0xff] }
  0x1d   : > { %1104 = vmatpush3.msra.mxu1 %v528_v17  ;;  %1073 = vmatmul.mubr.msk.f32.gmra.mxu0 %vm307_vm1, %v289_v19  ;;  %v973_v35 = vld [vmem:[%s1462_s4] ss:$0 sm:$0xff] }
  0x1e   : > { %1105 = vmatprep.subr.mxu1 %v527_v18  ;;  %1075 = vmatprep.mubr.msk.f32.mxu0 %vm307_vm1, %v290_v20 }
  0x1f   : > { %1106 = vmatpush3.msra.mxu1 %v527_v18  ;;  %1147 = vmatprep.subr.mxu0 %v718_v36 }
  0x20   : > { %1107 = vmatprep.subr.mxu1 %v526_v21  ;;  %1148 = vmatpush3.msra.mxu0 %v718_v36 }
  0x21   : > { %1108 = vmatpush3.msra.mxu1 %v526_v21  ;;  %1076 = vmatmul.mubr.msk.f32.gmra.mxu0 %vm307_vm1, %v291_v23 }
  0x22   : > { %1109 = vmatprep.subr.mxu1 %v525_v22  ;;  %1078 = vmatprep.mubr.msk.f32.mxu0 %vm307_vm1, %v292_v24 }
  0x23   : > { %1110 = vmatpush3.msra.mxu1 %v525_v22  ;;  %1149 = vmatprep.subr.mxu0 %v717_v37 }
  0x24   : > { %1111 = vmatprep.subr.mxu1 %v524_v30  ;;  %1150 = vmatpush3.msra.mxu0 %v717_v37 }
  0x25   : > { %1079 = vmatmul.mubr.msk.f32.gmra.mxu0 %vm307_vm1, %v293_v25  ;;  %1112 = vmatpush3.msra.mxu1 %v524_v30 }
  0x26   : > { %1081 = vmatprep.mubr.msk.f32.mxu0 %vm307_vm1, %v294_v26  ;;  %1113 = vmatprep.subr.mxu1 %v523_v31 }
  0x27   : > { %1114 = vmatpush3.msra.mxu1 %v523_v31  ;;  %1151 = vmatprep.subr.mxu0 %v716_v38 }
  0x28   : > { %1115 = vmatprep.subr.mxu1 %v522_v32  ;;  %1152 = vmatpush3.msra.mxu0 %v716_v38 }
  0x29   : > { %1082 = vmatmul.mubr.msk.f32.gmra.mxu0 %vm307_vm1, %v295_v27  ;;  %1116 = vmatpush3.msra.mxu1 %v522_v32  ;;  %v707_v32 = vld [vmem:[%s1463_s5 + $0x10] sm:$0xff] }
  0x2a   : > { %1084 = vmatprep.mubr.msk.f32.mxu0 %vm307_vm1, %v296_v28  ;;  %1117 = vmatprep.subr.mxu1 %v521_v33 }
  0x2b   : > { %1118 = vmatpush3.msra.mxu1 %v521_v33  ;;  %1153 = vmatprep.subr.mxu0 %v715_v39  ;;  %v706_v33 = vld [vmem:[%s1463_s5 + $0x8] sm:$0xff] }
  0x2c   : > { %1154 = vmatpush3.msra.mxu0 %v715_v39 }
  0x2d   : > { %1085 = vmatmul.mubr.msk.f32.gmra.mxu0 %vm307_vm1, %v297_v29  ;;  %1155 = vmatprep.subr.mxu0 %v714_v40 }
  0x2e   : > { %1156 = vmatpush3.msra.mxu0 %v714_v40 }
  0x2f   : > { %1157 = vmatprep.subr.mxu0 %v713_v41 }
  0x30   : > { %1158 = vmatpush3.msra.mxu0 %v713_v41 }
  0x31   : > { %1159 = vmatprep.subr.mxu0 %v712_v42 }
  0x32   : > { %1160 = vmatpush3.msra.mxu0 %v712_v42 }
  0x33   : > { %1161 = vmatprep.subr.mxu0 %v711_v43 }
  0x34   : > { %1162 = vmatpush3.msra.mxu0 %v711_v43 }
  0x35   : > { %1163 = vmatprep.subr.mxu0 %v710_v44 }
  0x36   : > { %1164 = vmatpush3.msra.mxu0 %v710_v44 }
  0x37   : > { %1165 = vmatprep.subr.mxu0 %v709_v45 }
  0x38   : > { %1166 = vmatpush3.msra.mxu0 %v709_v45 }
  0x39   : > { %1167 = vmatprep.subr.mxu0 %v708_v46 }
  0x3a   : > { %1168 = vmatpush3.msra.mxu0 %v708_v46 }
  0x3b   : > { %1169 = vmatprep.subr.mxu0 %v707_v32 }
  0x3c   : > { %1170 = vmatpush3.msra.mxu0 %v707_v32 }
  0x3d   : > { %1171 = vmatprep.subr.mxu0 %v706_v33 }
  0x3e   : > { %1172 = vmatpush3.msra.mxu0 %v706_v33 }
  0x3f   : > { %1173 = vmatprep.subr.mxu0 %v705_v34 }
  0x40   : > { %1174 = vmatpush3.msra.mxu0 %v705_v34 }
  0xd1   : > { %v1065_v48 = vpop.f32.mrf.mxu0 }
  0xd2   : > { %v432_v49 = vadd.f32 %v1065_v48, %v955_v47 }
  0xd3   : > { %v426_v50 = vpop.f32.mrf.mxu0 }
  0xd4   : > { %v427_v51 = vadd.f32 %v955_v47, %v426_v50  ;;  %v506_v54 = vmax.f32 %v432_v49, 0.0 }
  0xd5   : > { %v1068_v52 = vpop.f32.mrf.mxu0 }
  0xd6   : > { %v505_v53 = vmax.f32 %v427_v51, 0.0  ;;  %v442_v55 = vadd.f32 %v1068_v52, %v955_v47 }
  0xd7   : > { %v436_v56 = vpop.f32.mrf.mxu0 }
  0xd8   : > { %v437_v57 = vadd.f32 %v955_v47, %v436_v56  ;;  %1119 = vmatprep.mubr.f32.mxu1 %v505_v53  ;;  %v508_v60 = vmax.f32 %v442_v55, 0.0 }
  0xd9   : > { %v1071_v58 = vpop.f32.mrf.mxu0  ;;  %1120 = vmatmul.mubr.f32.vlgmr.msra.gmra.mxu1 %v506_v54 }
  0xda   : > { %v507_v59 = vmax.f32 %v437_v57, 0.0  ;;  %v452_v61 = vadd.f32 %v1071_v58, %v955_v47 }
  0xdb   : > { %v446_v62 = vpop.f32.mrf.mxu0 }
  0xdc   : > { %v447_v63 = vadd.f32 %v955_v47, %v446_v62  ;;  %1122 = vmatprep.mubr.f32.mxu1 %v507_v59  ;;  %v510_v2 = vmax.f32 %v452_v61, 0.0 }
  0xdd   : > { %v1074_v0 = vpop.f32.mrf.mxu0  ;;  %1123 = vmatmul.mubr.f32.gmra.mxu1 %v508_v60 }
  0xde   : > { %v509_v1 = vmax.f32 %v447_v63, 0.0  ;;  %v462_v3 = vadd.f32 %v1074_v0, %v955_v47 }
  0xdf   : > { %v456_v4 = vpop.f32.mrf.mxu0 }
  0xe0   : > { %v457_v5 = vadd.f32 %v955_v47, %v456_v4  ;;  %1125 = vmatprep.mubr.f32.mxu1 %v509_v1  ;;  %v512_v8 = vmax.f32 %v462_v3, 0.0 }
  0xe1   : > { %v1077_v6 = vpop.f32.mrf.mxu0  ;;  %1126 = vmatmul.mubr.f32.gmra.mxu1 %v510_v2 }
  0xe2   : > { %v511_v7 = vmax.f32 %v457_v5, 0.0  ;;  %v472_v9 = vadd.f32 %v1077_v6, %v955_v47 }
  0xe3   : > { %v466_v10 = vpop.f32.mrf.mxu0 }
  0xe4   : > { %v467_v11 = vadd.f32 %v955_v47, %v466_v10  ;;  %1128 = vmatprep.mubr.f32.mxu1 %v511_v7  ;;  %v514_v14 = vmax.f32 %v472_v9, 0.0 }
  0xe5   : > { %v1080_v12 = vpop.f32.mrf.mxu0  ;;  %1129 = vmatmul.mubr.f32.gmra.mxu1 %v512_v8 }
  0xe6   : > { %v513_v13 = vmax.f32 %v467_v11, 0.0  ;;  %v482_v15 = vadd.f32 %v1080_v12, %v955_v47 }
  0xe7   : > { %v476_v16 = vpop.f32.mrf.mxu0 }
  0xe8   : > { %v477_v17 = vadd.f32 %v955_v47, %v476_v16  ;;  %1131 = vmatprep.mubr.f32.mxu1 %v513_v13  ;;  %v516_v20 = vmax.f32 %v482_v15, 0.0 }
  0xe9   : > { %v1083_v18 = vpop.f32.mrf.mxu0  ;;  %1132 = vmatmul.mubr.f32.gmra.mxu1 %v514_v14 }
  0xea   : > { %v515_v19 = vmax.f32 %v477_v17, 0.0  ;;  %v492_v21 = vadd.f32 %v1083_v18, %v955_v47 }
  0xeb   : > { %v486_v22 = vpop.f32.mrf.mxu0 }
  0xec   : > { %v487_v23 = vadd.f32 %v955_v47, %v486_v22  ;;  %1134 = vmatprep.mubr.f32.mxu1 %v515_v19  ;;  %v518_v26 = vmax.f32 %v492_v21, 0.0 }
  0xed   : > { %v1086_v24 = vpop.f32.mrf.mxu0  ;;  %1135 = vmatmul.mubr.f32.gmra.mxu1 %v516_v20  ;;  %v974_v20 = vld [vmem:[%s1464_s6] ss:$0 sm:$0xff] }
  0xee   : > { %v517_v25 = vmax.f32 %v487_v23, 0.0  ;;  %v502_v27 = vadd.f32 %v1086_v24, %v955_v47 }
  0xef   : > { %v496_v28 = vpop.f32.mrf.mxu0 }
  0xf0   : > { %v497_v29 = vadd.f32 %v955_v47, %v496_v28  ;;  %1137 = vmatprep.mubr.f32.mxu1 %v517_v25  ;;  %v520_v31 = vmax.f32 %v502_v27, 0.0 }
  0xf1   : > { %1138 = vmatmul.mubr.f32.gmra.mxu1 %v518_v26 }
  0xf2   : > { %v519_v30 = vmax.f32 %v497_v29, 0.0 }
  0xf4   : > { %1140 = vmatprep.mubr.f32.mxu1 %v519_v30 }
  0xf5   : > { %1141 = vmatmul.mubr.f32.gmra.mxu1 %v520_v31 }
 0x199   : > { %v1121_v36 = vpop.f32.mrf.mxu1 }
 0x19a   : > { %v616_v37 = vadd.f32 %v1121_v36, %v973_v35 }
 0x19b   : > { %v610_v38 = vpop.f32.mrf.mxu1 }
 0x19c   : > { %v611_v39 = vadd.f32 %v973_v35, %v610_v38  ;;  %v690_v42 = vmax.f32 %v616_v37, 0.0 }
 0x19d   : > { %v1124_v40 = vpop.f32.mrf.mxu1 }
 0x19e   : > { %v689_v41 = vmax.f32 %v611_v39, 0.0  ;;  %v626_v43 = vadd.f32 %v1124_v40, %v973_v35 }
 0x19f   : > { %v620_v44 = vpop.f32.mrf.mxu1 }
 0x1a0   : > { %v621_v45 = vadd.f32 %v973_v35, %v620_v44  ;;  %1175 = vmatprep.mubr.f32.mxu0 %v689_v41  ;;  %v692_v48 = vmax.f32 %v626_v43, 0.0 }
 0x1a1   : > { %v1127_v46 = vpop.f32.mrf.mxu1  ;;  %1176 = vmatmul.mubr.f32.vlgmr.msra.gmra.mxu0 %v690_v42 }
 0x1a2   : > { %v691_v47 = vmax.f32 %v621_v45, 0.0  ;;  %v636_v49 = vadd.f32 %v1127_v46, %v973_v35 }
 0x1a3   : > { %v630_v50 = vpop.f32.mrf.mxu1 }
 0x1a4   : > { %v631_v51 = vadd.f32 %v973_v35, %v630_v50  ;;  %1178 = vmatprep.mubr.f32.mxu0 %v691_v47  ;;  %v694_v54 = vmax.f32 %v636_v49, 0.0 }
 0x1a5   : > { %v1130_v52 = vpop.f32.mrf.mxu1  ;;  %1179 = vmatmul.mubr.f32.gmra.mxu0 %v692_v48 }
 0x1a6   : > { %v693_v53 = vmax.f32 %v631_v51, 0.0  ;;  %v646_v55 = vadd.f32 %v1130_v52, %v973_v35 }
 0x1a7   : > { %v640_v56 = vpop.f32.mrf.mxu1 }
 0x1a8   : > { %v641_v57 = vadd.f32 %v973_v35, %v640_v56  ;;  %1181 = vmatprep.mubr.f32.mxu0 %v693_v53  ;;  %v696_v60 = vmax.f32 %v646_v55, 0.0 }
 0x1a9   : > { %v1133_v58 = vpop.f32.mrf.mxu1  ;;  %1182 = vmatmul.mubr.f32.gmra.mxu0 %v694_v54 }
 0x1aa   : > { %v695_v59 = vmax.f32 %v641_v57, 0.0  ;;  %v656_v61 = vadd.f32 %v1133_v58, %v973_v35 }
 0x1ab   : > { %v650_v62 = vpop.f32.mrf.mxu1 }
 0x1ac   : > { %v651_v63 = vadd.f32 %v973_v35, %v650_v62  ;;  %1184 = vmatprep.mubr.f32.mxu0 %v695_v59  ;;  %v698_v2 = vmax.f32 %v656_v61, 0.0 }
 0x1ad   : > { %v1136_v0 = vpop.f32.mrf.mxu1  ;;  %1185 = vmatmul.mubr.f32.gmra.mxu0 %v696_v60 }
 0x1ae   : > { %v697_v1 = vmax.f32 %v651_v63, 0.0  ;;  %v666_v3 = vadd.f32 %v1136_v0, %v973_v35 }
 0x1af   : > { %v660_v4 = vpop.f32.mrf.mxu1 }
 0x1b0   : > { %v661_v5 = vadd.f32 %v973_v35, %v660_v4  ;;  %1187 = vmatprep.mubr.f32.mxu0 %v697_v1  ;;  %v700_v8 = vmax.f32 %v666_v3, 0.0 }
 0x1b1   : > { %v1139_v6 = vpop.f32.mrf.mxu1  ;;  %1188 = vmatmul.mubr.f32.gmra.mxu0 %v698_v2 }
 0x1b2   : > { %v699_v7 = vmax.f32 %v661_v5, 0.0  ;;  %v676_v9 = vadd.f32 %v1139_v6, %v973_v35 }
 0x1b3   : > { %v670_v10 = vpop.f32.mrf.mxu1 }
 0x1b4   : > { %v671_v11 = vadd.f32 %v973_v35, %v670_v10  ;;  %1190 = vmatprep.mubr.f32.mxu0 %v699_v7  ;;  %v702_v14 = vmax.f32 %v676_v9, 0.0 }
 0x1b5   : > { %v1142_v12 = vpop.f32.mrf.mxu1  ;;  %1191 = vmatmul.mubr.f32.gmra.mxu0 %v700_v8 }
 0x1b6   : > { %v701_v13 = vmax.f32 %v671_v11, 0.0  ;;  %v686_v15 = vadd.f32 %v1142_v12, %v973_v35 }
 0x1b7   : > { %v680_v16 = vpop.f32.mrf.mxu1 }
 0x1b8   : > { %v681_v17 = vadd.f32 %v973_v35, %v680_v16  ;;  %1193 = vmatprep.mubr.f32.mxu0 %v701_v13  ;;  %v704_v19 = vmax.f32 %v686_v15, 0.0 }
 0x1b9   : > { %1194 = vmatmul.mubr.f32.gmra.mxu0 %v702_v14 }
 0x1ba   : > { %v703_v18 = vmax.f32 %v681_v17, 0.0 }
 0x1bc   : > { %1196 = vmatprep.mubr.f32.mxu0 %v703_v18 }
 0x1bd   : > { %1197 = vmatmul.mubr.f32.gmra.mxu0 %v704_v19 }
 0x261   : > { %v1177_v21 = vpop.f32.mrf.mxu0 }
 0x262   : > { %v800_v22 = vadd.f32 %v1177_v21, %v974_v20 }
 0x263   : > { %v794_v23 = vpop.f32.mrf.mxu0 }
 0x264   : > { %875 = vst.msk [vmem:[%s1421_s25 + $0x8] sm:$0xff] %vm873_vm2, %v800_v22  ;;  %v795_v24 = vadd.f32 %v974_v20, %v794_v23 }
 0x265   : > { %v1180_v25 = vpop.f32.mrf.mxu0 }
 0x266   : > { %874 = vst.msk [vmem:[%s1421_s25] sm:$0xff] %vm873_vm2, %v795_v24  ;;  %v810_v26 = vadd.f32 %v1180_v25, %v974_v20 }
 0x267   : > { %v804_v27 = vpop.f32.mrf.mxu0 }
 0x268   : > { %877 = vst.msk [vmem:[%s1421_s25 + $0x18] sm:$0xff] %vm873_vm2, %v810_v26  ;;  %v805_v28 = vadd.f32 %v974_v20, %v804_v27 }
 0x269   : > { %v1183_v29 = vpop.f32.mrf.mxu0 }
 0x26a   : > { %876 = vst.msk [vmem:[%s1421_s25 + $0x10] sm:$0xff] %vm873_vm2, %v805_v28  ;;  %v820_v30 = vadd.f32 %v1183_v29, %v974_v20 }
 0x26b   : > { %v814_v31 = vpop.f32.mrf.mxu0 }
 0x26c   : > { %879 = vst.msk [vmem:[%s1421_s25 + $0x28] sm:$0xff] %vm873_vm2, %v820_v30  ;;  %v815_v32 = vadd.f32 %v974_v20, %v814_v31 }
 0x26d   : > { %v1186_v33 = vpop.f32.mrf.mxu0 }
 0x26e   : > { %878 = vst.msk [vmem:[%s1421_s25 + $0x20] sm:$0xff] %vm873_vm2, %v815_v32  ;;  %v830_v34 = vadd.f32 %v1186_v33, %v974_v20 }
 0x26f   : > { %v824_v35 = vpop.f32.mrf.mxu0 }
 0x270   : > { %881 = vst.msk [vmem:[%s1421_s25 + $0x38] sm:$0xff] %vm873_vm2, %v830_v34  ;;  %v825_v36 = vadd.f32 %v974_v20, %v824_v35 }
 0x271   : > { %v1189_v37 = vpop.f32.mrf.mxu0 }
 0x272   : > { %880 = vst.msk [vmem:[%s1421_s25 + $0x30] sm:$0xff] %vm873_vm2, %v825_v36  ;;  %v840_v38 = vadd.f32 %v1189_v37, %v974_v20 }
 0x273   : > { %v834_v39 = vpop.f32.mrf.mxu0 }
 0x274   : > { %883 = vst.msk [vmem:[%s1421_s25 + $0x48] sm:$0xff] %vm873_vm2, %v840_v38  ;;  %v835_v40 = vadd.f32 %v974_v20, %v834_v39 }
 0x275   : > { %v1192_v41 = vpop.f32.mrf.mxu0 }
 0x276   : > { %882 = vst.msk [vmem:[%s1421_s25 + $0x40] sm:$0xff] %vm873_vm2, %v835_v40  ;;  %v850_v42 = vadd.f32 %v1192_v41, %v974_v20 }
 0x277   : > { %v844_v43 = vpop.f32.mrf.mxu0 }
 0x278   : > { %885 = vst.msk [vmem:[%s1421_s25 + $0x58] sm:$0xff] %vm873_vm2, %v850_v42  ;;  %v845_v44 = vadd.f32 %v974_v20, %v844_v43 }
 0x279   : > { %v1195_v45 = vpop.f32.mrf.mxu0 }
 0x27a   : > { %884 = vst.msk [vmem:[%s1421_s25 + $0x50] sm:$0xff] %vm873_vm2, %v845_v44  ;;  %v860_v46 = vadd.f32 %v1195_v45, %v974_v20 }
 0x27b   : > { %v854_v47 = vpop.f32.mrf.mxu0 }
 0x27c   : > { %887 = vst.msk [vmem:[%s1421_s25 + $0x68] sm:$0xff] %vm873_vm2, %v860_v46  ;;  %v855_v48 = vadd.f32 %v974_v20, %v854_v47 }
 0x27d   : > { %v1198_v49 = vpop.f32.mrf.mxu0 }
 0x27e   : > { %886 = vst.msk [vmem:[%s1421_s25 + $0x60] sm:$0xff] %vm873_vm2, %v855_v48  ;;  %v870_v50 = vadd.f32 %v1198_v49, %v974_v20 }
 0x27f   : > { %v864_v51 = vpop.f32.mrf.mxu0 }
 0x280   : > { %889 = vst.msk [vmem:[%s1421_s25 + $0x78] sm:$0xff] %vm873_vm2, %v870_v50  ;;  %v865_v52 = vadd.f32 %v974_v20, %v864_v51 }
 0x282   : > { %888 = vst.msk [vmem:[%s1421_s25 + $0x70] sm:$0xff] %vm873_vm2, %v865_v52 }
 0x283 PF: > { %s17_s24 = sadd.s32 1, %s1213_s24  }
 0x284   : > { %p14_p4 = scmp.ge.s32.totalorder %s17_s24, 4  }
 0x286   :  { %16 = sbr.rel (!%p14_p4) target bundleno = 1 (0x1), region = 78 }

</bundles_post_ra>
